<compile_context>
chip_gen: v6e
topology: v6e:2x2x1
jax: 0.10.0
libtpu: 0.0.40
codegen_flags: <defaults>
</compile_context>

<pallas_src>
import functools

import jax
import jax.numpy as jnp
from jax.experimental import pallas as pl
from jax.experimental.pallas import tpu as pltpu


def _hloss_kernel(x_ref, o_ref, *, tile_rows, sub_rows, total_rows,
                  needs_mask, native_max):
    """Compute -sum(p * log p) over this row tile; write it to o_ref (broadcast).

    x_ref: (tile_rows, C) logits tile (native dtype) in VMEM
    o_ref: (1, 8, 128) f32 lane-dense per-block partial
    """
    blk = pl.program_id(0)
    num_full = tile_rows // sub_rows
    rem = tile_rows % sub_rows

    def chunk_plogp(r0, nrows):
        xs = x_ref[pl.ds(r0, nrows), :]
        if native_max:
            # bf16 row-max at native width (exact: max of bf16 values is bf16).
            m = jnp.max(xs, axis=-1, keepdims=True).astype(jnp.float32)
            x = xs.astype(jnp.float32)
        else:
            x = xs.astype(jnp.float32)
            m = jnp.max(x, axis=-1, keepdims=True)
        # Numerically stable entropy with a single exp pass:
        #   e = exp(x - m), Z = sum(e)
        #   row_sum(p * log p) = sum(e * (x - m)) / Z - log(Z)
        s = x - m
        e = jnp.exp(s)
        z = jnp.sum(e, axis=-1, keepdims=True)
        es = jnp.sum(e * s, axis=-1, keepdims=True)
        h = es / z - jnp.log(z)                  # (nrows, 1) = sum(p*logp) per row
        if needs_mask:
            # Trailing partial block: rows past `total_rows` hold unspecified
            # padding -> zero their contribution (select, so NaN-safe).
            rid = (blk * tile_rows + r0
                   + jax.lax.broadcasted_iota(jnp.int32, (nrows, 1), 0))
            h = jnp.where(rid < total_rows, h, 0.0)
        return jnp.sum(h)

    if num_full == 1:
        plogp = chunk_plogp(0, sub_rows)
    else:
        def body(k, acc):
            r0 = pl.multiple_of(k * sub_rows, sub_rows)
            return acc + chunk_plogp(r0, sub_rows)
        plogp = jax.lax.fori_loop(0, num_full, body, jnp.float32(0.0),
                                  unroll=num_full <= 8)
    if rem:
        plogp = plogp + chunk_plogp(num_full * sub_rows, rem)

    # result contribution = -sum(p * log p); broadcast over the lane-dense block.
    o_ref[...] = jnp.broadcast_to(-plogp, o_ref.shape)


@functools.partial(jax.jit, static_argnames=("per_buffer_bytes", "sub_chunk_bytes"))
def hloss_logit(x, per_buffer_bytes=8 * 1024 * 1024, sub_chunk_bytes=256 * 1024):
    """Entropy loss over logits x of shape (..., C). Returns an f32 scalar."""
    n = x.shape[-1]
    x2 = x.reshape(-1, n)
    rows = x2.shape[0]
    if rows == 0 or n == 0:
        return jnp.float32(0.0)

    itemsize = x2.dtype.itemsize
    # Sublane packing: 8 rows for 4-byte dtypes, 16 for 2-byte, 32 for 1-byte.
    sublane = max(8, 32 // max(1, itemsize))

    # Compute sub-chunk: ~sub_chunk_bytes of f32 working set per intermediate.
    sub_rows = max(sublane, min(1024, sub_chunk_bytes // max(1, n * 4)))
    sub_rows = max(sublane, (sub_rows // sublane) * sublane)

    # DMA tile rows: largest multiple of sub_rows within the per-buffer budget,
    # never exceeding the real row count (so the block never overhangs the array
    # in the row dim; when tr == rows the block equals the full array dim).
    tr = per_buffer_bytes // max(1, n * itemsize)
    tr = max(sub_rows, (tr // sub_rows) * sub_rows)
    tr = min(tr, rows)
    sub_rows = min(sub_rows, tr)

    total_blocks = pl.cdiv(rows, tr)
    needs_mask = (rows % tr) != 0          # trailing partial block only

    # Device heuristics (trace-time, Python-level).
    try:
        kind = jax.devices()[0].device_kind.lower()
    except Exception:
        kind = ""
    native_max = (x2.dtype == jnp.bfloat16) and ("v5" not in kind)

    kernel = functools.partial(
        _hloss_kernel,
        tile_rows=tr,
        sub_rows=sub_rows,
        total_rows=rows,
        needs_mask=needs_mask,
        native_max=native_max,
    )

    tile_bytes = tr * n * itemsize
    # Double-buffered input + small compute footprint; cap below v7x's 64 MiB
    # physical VMEM (48 MiB), floor at the v6e/v7x default 32 MiB.
    vmem_limit = int(min(48 * 1024 * 1024,
                         max(32 * 1024 * 1024, 2 * tile_bytes + 8 * 1024 * 1024)))

    cost = pl.CostEstimate(
        flops=6 * rows * n,
        transcendentals=rows * n,
        bytes_accessed=rows * n * itemsize + total_blocks * 8 * 128 * 4,
    )

    out = pl.pallas_call(
        kernel,
        out_shape=jax.ShapeDtypeStruct((total_blocks, 8, 128), jnp.float32),
        grid_spec=pltpu.PrefetchScalarGridSpec(
            num_scalar_prefetch=0,
            grid=(total_blocks,),
            in_specs=[pl.BlockSpec((tr, n), lambda i: (i, 0))],
            out_specs=pl.BlockSpec((1, 8, 128), lambda i: (i, 0, 0)),
        ),
        compiler_params=pltpu.CompilerParams(
            # Independent row blocks: shard across TensorCores on v7x; harmless
            # (near-zero impact) on single-TC v5e/v6e.
            dimension_semantics=("parallel",),
            vmem_limit_bytes=vmem_limit,
        ),
        cost_estimate=cost,
    )(x2)

    # Each block's partial is broadcast over its (8, 128) output block.
    return jnp.sum(out[:, 0, 0])


def hloss_logit_ref(x):
    """Pure-JAX reference matching the PyTorch module."""
    xf = x.astype(jnp.float32)
    logp = jax.nn.log_softmax(xf, axis=-1)
    p = jax.nn.softmax(xf, axis=-1)
    return -jnp.sum(p * logp)


if __name__ == "__main__":
    key = jax.random.PRNGKey(0)

    # (batch, groups, seq, classes) logits; softmax over the last axis.
    x = jax.random.normal(key, (2, 4, 16, 128), dtype=jnp.float32) * 2.0
    out = jax.block_until_ready(hloss_logit(x))
    ref = hloss_logit_ref(x)
    assert jnp.allclose(out, ref, rtol=1e-5, atol=1e-3), (out, ref)

    # bf16 input, row count / class count not multiples of the native tile:
    # exercises the full-array-dim block path and the native bf16 row-max.
    x2 = jax.random.normal(jax.random.PRNGKey(1), (3, 7, 96), dtype=jnp.bfloat16)
    out2 = jax.block_until_ready(hloss_logit(x2))
    ref2 = hloss_logit_ref(x2)
    assert jnp.allclose(out2, ref2, rtol=1e-4, atol=1e-3), (out2, ref2)

    # Small per-buffer / sub-chunk budgets to force multiple row blocks, the
    # inner fori_loop sub-chunking, and the masked trailing partial block.
    x3 = jax.random.normal(jax.random.PRNGKey(2), (5, 37, 128), dtype=jnp.float32)
    out3 = jax.block_until_ready(
        hloss_logit(x3, per_buffer_bytes=32 * 1024, sub_chunk_bytes=16 * 1024))
    ref3 = hloss_logit_ref(x3)
    assert jnp.allclose(out3, ref3, rtol=1e-5, atol=1e-3), (out3, ref3)

    print("KERNEL_OK")
</pallas_src>

<mosaic_0001>
module attributes {stable_mosaic.version = 11 : i64} {
  func.func @_hloss_kernel(%arg0: i32, %arg1: memref<128x128xf32, #tpu.memory_space<vmem>>, %arg2: memref<1x8x128xf32, #tpu.memory_space<vmem>>) attributes {dimension_semantics = [#tpu.dimension_semantics<parallel>], iteration_bounds = array<i64: 1>, scalar_prefetch = 0 : i64, scratch_operands = 0 : i64, tpu.core_type = #tpu.core_type<tc>, window_params = [{transform_indices = @transform_0, window_bounds = array<i64: 128, 128>}, {transform_indices = @transform_1, window_bounds = array<i64: 1, 8, 128>}]} {
    %c0 = arith.constant 0 : index
    %c0_0 = arith.constant 0 : index
    %0 = vector.load %arg1[%c0, %c0_0] : memref<128x128xf32, #tpu.memory_space<vmem>>, vector<128x128xf32>
    %cst = arith.constant dense<0xFF800000> : vector<128xf32>
    %1 = vector.multi_reduction <maximumf>, %0, %cst [1] : vector<128x128xf32> to vector<128xf32>
    %2 = vector.shape_cast %1 : vector<128xf32> to vector<128x1xf32>
    %3 = vector.broadcast %2 : vector<128x1xf32> to vector<128x128xf32>
    %4 = arith.subf %0, %3 : vector<128x128xf32>
    %5 = math.exp %4 : vector<128x128xf32>
    %cst_1 = arith.constant dense<0.000000e+00> : vector<128xf32>
    %6 = vector.multi_reduction <add>, %5, %cst_1 [1] : vector<128x128xf32> to vector<128xf32>
    %7 = vector.shape_cast %6 : vector<128xf32> to vector<128x1xf32>
    %8 = arith.mulf %5, %4 : vector<128x128xf32>
    %cst_2 = arith.constant dense<0.000000e+00> : vector<128xf32>
    %9 = vector.multi_reduction <add>, %8, %cst_2 [1] : vector<128x128xf32> to vector<128xf32>
    %10 = vector.shape_cast %9 : vector<128xf32> to vector<128x1xf32>
    %11 = arith.divf %10, %7 : vector<128x1xf32>
    %12 = math.log %7 : vector<128x1xf32>
    %13 = arith.subf %11, %12 : vector<128x1xf32>
    %14 = vector.shape_cast %13 : vector<128x1xf32> to vector<1x128x1xf32>
    %cst_3 = arith.constant dense<0.000000e+00> : vector<1xf32>
    %15 = vector.multi_reduction <add>, %14, %cst_3 [1, 2] : vector<1x128x1xf32> to vector<1xf32>
    %16 = vector.shape_cast %15 : vector<1xf32> to vector<1x1x1xf32>
    %17 = vector.extract %16[0, 0, 0] : f32 from vector<1x1x1xf32>
    %cst_4 = arith.constant 0.000000e+00 : f32
    %18 = arith.subf %cst_4, %17 : f32
    %19 = vector.broadcast %18 : f32 to vector<1x8x128xf32>
    %c0_5 = arith.constant 0 : index
    %c0_6 = arith.constant 0 : index
    %c0_7 = arith.constant 0 : index
    %20 = vector.load %arg2[%c0_5, %c0_6, %c0_7] : memref<1x8x128xf32, #tpu.memory_space<vmem>>, vector<1x8x128xf32>
    tpu.vector_store %arg2[%c0_5, %c0_6, %c0_7], %19 {strides = array<i32>} : memref<1x8x128xf32, #tpu.memory_space<vmem>>, vector<1x8x128xf32>,
    return
  }
  func.func @transform_0(%arg0: i32) -> (i32, i32) {
    %c0_i32 = arith.constant 0 : i32
    %c0_i32_0 = arith.constant 0 : i32
    return %arg0, %c0_i32 : i32, i32
  }
  func.func @transform_1(%arg0: i32) -> (i32, i32, i32) {
    %c0_i32 = arith.constant 0 : i32
    %c0_i32_0 = arith.constant 0 : i32
    %c0_i32_1 = arith.constant 0 : i32
    return %arg0, %c0_i32, %c0_i32_0 : i32, i32, i32
  }
}

</mosaic_0001>

<bundles_post_ra>
// kernel: hloss_logit.1
= control target key start
LH: loop header
LB: loop body
LE: loop exit
PB: predicated region body
PF: predicated region fallthrough
CT: control target
= control target key end

     0   :  { %6 = vsyncpa [#allocation3], 0  ;;  %s450_s6 = smov [#allocation2]   ;;  %s553_s0 = inlined_call_operand.hbm [shape: f32[128,128], index: 0, kind: input, shape index: {}]   ;;  %s554_s1 = inlined_call_operand.vmem [shape: f32[1,8,128], index: 1, kind: output, shape index: {}]  }
   0x1   :  { %s12_s7 = sshll.u32 %s450_s6, 4  ;;  %s13_s7 = int_to_ptr.vmem [resolvable:$true] %s12_s7 }
   0x2   :  { %s436_s8 = scalar_lea.vmem %s13_s7, 2048  ;;  %p441_p1 = scmp.lt.s32.totalorder %s13_s7, %s13_s7 }
   0x3   :  { %p437_p0 = scmp.ne.s32.totalorder %s13_s7, %s436_s8  ;;  %p442_p2 = scmp.lt.s32.totalorder %s436_s8, %s436_s8 }
   0x5   :  { %p443_p3 = por %p442_p2, %p441_p1 }
   0x7   :  { %p444_p4 = pnand %p443_p3, %p437_p0 }
   0x9   :  { %447 = shalt.err (!%p444_p4)
}
   0xa   :  { %s451_s9 = smov 128   ;;  %s452_s10 = smov 8  }
   0xb   :  { %18 = dma.hbm_to_vmem [thread:$0]  %s553_s0, 2048, %s13_s7, [#allocation3], %s451_s9, %s451_s9, %s452_s10  }
   0xc   :  { %448 = dma.done.wait [#allocation3], 2048  }
   0xd   :  { %449 = vsyncadd [#allocation3], 4294965248  ;;  %v24_v0 = vld [vmem:[#allocation2 + $0x10] sm:$0xff]  ;;  %v22_v1 = vld [vmem:[#allocation2] sm:$0xff]  ;;  %vm278_vm0 = vcmask 7168  }
   0xe   :  { %42 = vmax.xlane.f32.xlu1 %v24_v0  ;;  %38 = vmax.xlane.f32.xlu0 %v22_v1  ;;  %v25_v2 = vld [vmem:[#allocation2 + $0x18] sm:$0xff]  ;;  %v23_v3 = vld [vmem:[#allocation2 + $0x8] sm:$0xff]  ;;  %v26_v5 = vld [vmem:[#allocation2 + $0x20] sm:$0xff] }
   0xf   :  { %v27_v4 = vld [vmem:[#allocation2 + $0x28] sm:$0xff]  ;;  %v29_v6 = vld [vmem:[#allocation2 + $0x38] sm:$0xff]  ;;  %v28_v7 = vld [vmem:[#allocation2 + $0x30] sm:$0xff] }
  0x10   :  { %v31_v8 = vld [vmem:[#allocation2 + $0x48] sm:$0xff]  ;;  %v30_v9 = vld [vmem:[#allocation2 + $0x40] sm:$0xff]  ;;  %v33_v10 = vld [vmem:[#allocation2 + $0x58] sm:$0xff] }
  0x11   :  { %v32_v11 = vld [vmem:[#allocation2 + $0x50] sm:$0xff]  ;;  %v466_v12 = vld [vmem:[#allocation2 + $0x68] sm:$0xff]  ;;  %v468_v13 = vld [vmem:[#allocation2 + $0x60] sm:$0xff] }
  0x12   :  { %44 = vmax.xlane.f32.xlu1 %v25_v2  ;;  %40 = vmax.xlane.f32.xlu0 %v23_v3  ;;  %v472_v14 = vld [vmem:[#allocation2 + $0x70] sm:$0xff]  ;;  %v474_v15 = vld [vmem:[#allocation2 + $0x78] sm:$0xff] }
  0x16   :  { %48 = vmax.xlane.f32.xlu1 %v27_v4  ;;  %46 = vmax.xlane.f32.xlu0 %v26_v5 }
  0x1a   :  { %52 = vmax.xlane.f32.xlu1 %v29_v6  ;;  %50 = vmax.xlane.f32.xlu0 %v28_v7 }
  0x1e   :  { %56 = vmax.xlane.f32.xlu1 %v31_v8  ;;  %54 = vmax.xlane.f32.xlu0 %v30_v9 }
  0x22   :  { %60 = vmax.xlane.f32.xlu1 %v33_v10  ;;  %58 = vmax.xlane.f32.xlu0 %v32_v11 }
  0x26   :  { %64 = vmax.xlane.f32.xlu1 %v466_v12  ;;  %62 = vmax.xlane.f32.xlu0 %v468_v13 }
  0x2a   :  { %66 = vmax.xlane.f32.xlu0 %v472_v14  ;;  %68 = vmax.xlane.f32.xlu1 %v474_v15 }
  0x97   :  { %v43_v16 = vpop.xlane.xlu1 %42  ;;  %v39_v17 = vpop.xlane.xlu0 %38 }
  0x98   :  { %v478_v18 = vsub.f32 %v24_v0, %v43_v16  ;;  %v480_v19 = vsub.f32 %v22_v1, %v39_v17 }
  0x9a   :  { %v86_v20 = vmul.f32 1.442695, %v480_v19  ;;  %v90_v23 = vmul.f32 1.442695, %v478_v18 }
  0x9b   :  { %v45_v21 = vpop.xlane.xlu1 %44  ;;  %v41_v22 = vpop.xlane.xlu0 %40 }
  0x9c   :  { %v484_v24 = vsub.f32 %v25_v2, %v45_v21  ;;  %v486_v25 = vsub.f32 %v23_v3, %v41_v22  ;;  %332 = vpow2.f32 %v86_v20 }
  0x9d   :  { %334 = vpow2.f32 %v90_v23 }
  0x9e   :  { %v88_v26 = vmul.f32 1.442695, %v486_v25  ;;  %v92_v29 = vmul.f32 1.442695, %v484_v24 }
  0x9f   :  { %v49_v27 = vpop.xlane.xlu1 %48  ;;  %v47_v28 = vpop.xlane.xlu0 %46 }
  0xa0   :  { %v490_v30 = vsub.f32 %v27_v4, %v49_v27  ;;  %v492_v31 = vsub.f32 %v26_v5, %v47_v28  ;;  %336 = vpow2.f32 %v88_v26 }
  0xa1   :  { %338 = vpow2.f32 %v92_v29 }
  0xa2   :  { %v94_v32 = vmul.f32 1.442695, %v492_v31  ;;  %v96_v35 = vmul.f32 1.442695, %v490_v30 }
  0xa3   :  { %v53_v33 = vpop.xlane.xlu1 %52  ;;  %v51_v34 = vpop.xlane.xlu0 %50 }
  0xa4   :  { %v496_v36 = vsub.f32 %v29_v6, %v53_v33  ;;  %v498_v37 = vsub.f32 %v28_v7, %v51_v34  ;;  %340 = vpow2.f32 %v94_v32 }
  0xa5   :  { %342 = vpow2.f32 %v96_v35 }
  0xa6   :  { %v98_v38 = vmul.f32 1.442695, %v498_v37  ;;  %v100_v41 = vmul.f32 1.442695, %v496_v36 }
  0xa7   :  { %v57_v39 = vpop.xlane.xlu1 %56  ;;  %v55_v40 = vpop.xlane.xlu0 %54 }
  0xa8   :  { %v502_v42 = vsub.f32 %v30_v9, %v55_v40  ;;  %344 = vpow2.f32 %v98_v38  ;;  %v504_v43 = vsub.f32 %v31_v8, %v57_v39 }
  0xa9   :  { %v506_v44 = vpop.eup %332  ;;  %346 = vpow2.f32 %v100_v41 }
  0xaa   :  { %v102_v45 = vmul.f32 1.442695, %v502_v42  ;;  %118 = vadd.xlane.f32.xlu0 %v506_v44  ;;  %v335_v47 = vpop.eup %334  ;;  %v104_v48 = vmul.f32 1.442695, %v504_v43  ;;  %v150_v20 = vmul.f32 %v506_v44, %v480_v19 }
  0xab   :  { %v59_v46 = vpop.xlane.xlu0 %58  ;;  %v61_v51 = vpop.xlane.xlu1 %60  ;;  %v152_v7 = vmul.f32 %v335_v47, %v478_v18 }
  0xac   :  { %348 = vpow2.f32 %v102_v45  ;;  %v511_v49 = vsub.f32 %v32_v11, %v59_v46  ;;  %v513_v53 = vsub.f32 %v33_v10, %v61_v51 }
  0xad   :  { %v337_v50 = vpop.eup %336  ;;  %350 = vpow2.f32 %v104_v48 }
  0xae   :  { %122 = vadd.xlane.f32.xlu0 %v335_v47  ;;  %120 = vadd.xlane.f32.xlu1 %v337_v50  ;;  %v339_v52 = vpop.eup %338  ;;  %v106_v54 = vmul.f32 1.442695, %v511_v49  ;;  %v108_v58 = vmul.f32 1.442695, %v513_v53  ;;  %v151_v2 = vmul.f32 %v337_v50, %v486_v25 }
  0xaf   :  { %v63_v56 = vpop.xlane.xlu0 %62  ;;  %v65_v0 = vpop.xlane.xlu1 %64 }
  0xb0   :  { %352 = vpow2.f32 %v106_v54  ;;  %v82_v59 = vsub.f32 %v468_v13, %v63_v56  ;;  %v83_v1 = vsub.f32 %v466_v12, %v65_v0  ;;  %v153_v12 = vmul.f32 %v339_v52, %v484_v24 }
  0xb1   :  { %v341_v55 = vpop.eup %340  ;;  %354 = vpow2.f32 %v108_v58 }
  0xb2   :  { %124 = vadd.xlane.f32.xlu1 %v339_v52  ;;  %126 = vadd.xlane.f32.xlu0 %v341_v55  ;;  %v343_v57 = vpop.eup %342  ;;  %v110_v62 = vmul.f32 1.442695, %v82_v59  ;;  %v112_v5 = vmul.f32 1.442695, %v83_v1  ;;  %v154_v17 = vmul.f32 %v341_v55, %v492_v31 }
  0xb3   :  { %v67_v4 = vpop.xlane.xlu0 %66  ;;  %v69_v9 = vpop.xlane.xlu1 %68  ;;  %v155_v18 = vmul.f32 %v343_v57, %v490_v30 }
  0xb4   :  { %356 = vpow2.f32 %v110_v62  ;;  %v84_v6 = vsub.f32 %v472_v14, %v67_v4  ;;  %v85_v11 = vsub.f32 %v474_v15, %v69_v9 }
  0xb5   :  { %v345_v60 = vpop.eup %344  ;;  %358 = vpow2.f32 %v112_v5 }
  0xb6   :  { %128 = vadd.xlane.f32.xlu1 %v343_v57  ;;  %130 = vadd.xlane.f32.xlu0 %v345_v60  ;;  %v347_v61 = vpop.eup %346  ;;  %v114_v10 = vmul.f32 1.442695, %v84_v6  ;;  %v116_v16 = vmul.f32 1.442695, %v85_v11  ;;  %v156_v15 = vmul.f32 %v345_v60, %v498_v37 }
  0xb7   :  { %v157_v22 = vmul.f32 %v347_v61, %v496_v36 }
  0xb8   :  { %360 = vpow2.f32 %v114_v10 }
  0xb9   :  { %v349_v63 = vpop.eup %348  ;;  %362 = vpow2.f32 %v116_v16 }
  0xba   :  { %132 = vadd.xlane.f32.xlu1 %v347_v61  ;;  %134 = vadd.xlane.f32.xlu0 %v349_v63  ;;  %v351_v3 = vpop.eup %350  ;;  %v158_v24 = vmul.f32 %v349_v63, %v502_v42 }
  0xbb   :  { %v159_v19 = vmul.f32 %v351_v3, %v504_v43 }
  0xbd   :  { %v353_v8 = vpop.eup %352 }
  0xbe   :  { %136 = vadd.xlane.f32.xlu1 %v351_v3  ;;  %168 = vadd.xlane.f32.xlu0 %v151_v2  ;;  %v355_v13 = vpop.eup %354  ;;  %v160_v26 = vmul.f32 %v353_v8, %v511_v49 }
  0xbf   :  { %v161_v28 = vmul.f32 %v355_v13, %v513_v53 }
  0xc1   :  { %v357_v14 = vpop.eup %356 }
  0xc2   :  { %170 = vadd.xlane.f32.xlu0 %v152_v7  ;;  %138 = vadd.xlane.f32.xlu1 %v353_v8  ;;  %v359_v21 = vpop.eup %358  ;;  %v162_v27 = vmul.f32 %v357_v14, %v82_v59 }
  0xc3   :  { %v163_v29 = vmul.f32 %v359_v21, %v83_v1 }
  0xc5   :  { %v361_v23 = vpop.eup %360 }
  0xc6   :  { %172 = vadd.xlane.f32.xlu0 %v153_v12  ;;  %140 = vadd.xlane.f32.xlu1 %v355_v13  ;;  %v363_v25 = vpop.eup %362  ;;  %v164_v30 = vmul.f32 %v361_v23, %v84_v6 }
  0xc7   :  { %v165_v31 = vmul.f32 %v363_v25, %v85_v11 }
  0xca   :  { %174 = vadd.xlane.f32.xlu0 %v154_v17  ;;  %142 = vadd.xlane.f32.xlu1 %v357_v14 }
  0xce   :  { %176 = vadd.xlane.f32.xlu0 %v155_v18  ;;  %166 = vadd.xlane.f32.xlu1 %v150_v20 }
  0xd2   :  { %178 = vadd.xlane.f32.xlu0 %v156_v15  ;;  %144 = vadd.xlane.f32.xlu1 %v359_v21 }
  0xd6   :  { %180 = vadd.xlane.f32.xlu0 %v157_v22  ;;  %146 = vadd.xlane.f32.xlu1 %v361_v23 }
  0xda   :  { %182 = vadd.xlane.f32.xlu0 %v158_v24  ;;  %148 = vadd.xlane.f32.xlu1 %v363_v25 }
  0xde   :  { %186 = vadd.xlane.f32.xlu0 %v160_v26  ;;  %184 = vadd.xlane.f32.xlu1 %v159_v19 }
  0xe2   :  { %190 = vadd.xlane.f32.xlu0 %v162_v27  ;;  %188 = vadd.xlane.f32.xlu1 %v161_v28 }
  0xe6   :  { %192 = vadd.xlane.f32.xlu1 %v163_v29  ;;  %194 = vadd.xlane.f32.xlu0 %v164_v30 }
  0xea   :  { %196 = vadd.xlane.f32.xlu1 %v165_v31 }
 0x133   :  { %v119_v32 = vpop.xlane.xlu0 %118 }
 0x134   :  { %364 = vrcp.f32 %v119_v32 }
 0x137   :  { %v121_v33 = vpop.xlane.xlu1 %120  ;;  %v123_v34 = vpop.xlane.xlu0 %122 }
 0x138   :  { %366 = vrcp.f32 %v121_v33 }
 0x139   :  { %368 = vlog2.f32 %v121_v33 }
 0x13a   :  { %370 = vlog2.f32 %v119_v32 }
 0x13b   :  { %v125_v35 = vpop.xlane.xlu1 %124  ;;  %v127_v36 = vpop.xlane.xlu0 %126  ;;  %372 = vrcp.f32 %v123_v34 }
 0x13c   :  { %374 = vlog2.f32 %v123_v34 }
 0x13d   :  { %376 = vlog2.f32 %v125_v35 }
 0x13e   :  { %378 = vrcp.f32 %v125_v35 }
 0x13f   :  { %v129_v37 = vpop.xlane.xlu1 %128  ;;  %v131_v38 = vpop.xlane.xlu0 %130  ;;  %380 = vlog2.f32 %v127_v36 }
 0x140   :  { %382 = vrcp.f32 %v127_v36 }
 0x141   :  { %384 = vlog2.f32 %v129_v37  ;;  %v365_v47 = vpop.eup %364 }
 0x142   :  { %386 = vrcp.f32 %v129_v37 }
 0x143   :  { %v133_v39 = vpop.xlane.xlu1 %132  ;;  %v135_v40 = vpop.xlane.xlu0 %134  ;;  %388 = vlog2.f32 %v131_v38 }
 0x144   :  { %390 = vrcp.f32 %v131_v38 }
 0x145   :  { %v367_v48 = vpop.eup %366  ;;  %392 = vrcp.f32 %v133_v39 }
 0x146   :  { %v369_v49 = vpop.eup %368  ;;  %394 = vlog2.f32 %v133_v39 }
 0x147   :  { %v137_v41 = vpop.xlane.xlu1 %136  ;;  %v169_v42 = vpop.xlane.xlu0 %168  ;;  %396 = vlog2.f32 %v135_v40  ;;  %v233_v56 = vmul.f32 0.6931472, %v369_v49 }
 0x148   :  { %v371_v50 = vpop.eup %370  ;;  %v201_v51 = vmul.f32 %v367_v48, %v169_v42  ;;  %398 = vrcp.f32 %v135_v40 }
 0x149   :  { %v373_v54 = vpop.eup %372  ;;  %400 = vlog2.f32 %v137_v41  ;;  %v231_v62 = vmul.f32 0.6931472, %v371_v50 }
 0x14a   :  { %v375_v55 = vpop.eup %374  ;;  %v263_v60 = vsub.f32 %v201_v51, %v233_v56 }
 0x14b   :  { %v139_v43 = vpop.xlane.xlu1 %138  ;;  %v171_v44 = vpop.xlane.xlu0 %170  ;;  %v235_v1 = vmul.f32 0.6931472, %v375_v55 }
 0x14c   :  { %v377_v57 = vpop.eup %376  ;;  %v203_v58 = vmul.f32 %v373_v54, %v171_v44  ;;  %402 = vlog2.f32 %v139_v43  ;;  %v280_v11 = vsel %vm278_vm0, %v263_v60, 0.0 }
 0x14d   :  { %v379_v59 = vpop.eup %378  ;;  %404 = vrcp.f32 %v137_v41  ;;  %v237_v5 = vmul.f32 0.6931472, %v377_v57 }
 0x14e   :  { %v381_v0 = vpop.eup %380  ;;  %406 = vrcp.f32 %v139_v43  ;;  %v264_v7 = vsub.f32 %v203_v58, %v235_v1 }
 0x14f   :  { %v141_v45 = vpop.xlane.xlu1 %140  ;;  %v173_v46 = vpop.xlane.xlu0 %172  ;;  %v239_v12 = vmul.f32 0.6931472, %v381_v0 }
 0x150   :  { %v205_v2 = vmul.f32 %v379_v59, %v173_v46  ;;  %v383_v4 = vpop.eup %382  ;;  %408 = vlog2.f32 %v141_v45  ;;  %v282_v24 = vsel %vm278_vm0, %v264_v7, 0.0 }
 0x151   :  { %v385_v6 = vpop.eup %384 }
 0x152   :  { %v387_v10 = vpop.eup %386  ;;  %v265_v14 = vsub.f32 %v205_v2, %v237_v5  ;;  %v241_v22 = vmul.f32 0.6931472, %v385_v6 }
 0x153   :  { %v143_v52 = vpop.xlane.xlu1 %142  ;;  %v175_v53 = vpop.xlane.xlu0 %174 }
 0x154   :  { %v207_v8 = vmul.f32 %v383_v4, %v175_v53  ;;  %v389_v17 = vpop.eup %388  ;;  %410 = vlog2.f32 %v143_v52  ;;  %v284_v31 = vsel %vm278_vm0, %v265_v14, 0.0 }
 0x155   :  { %v391_v15 = vpop.eup %390  ;;  %412 = vrcp.f32 %v141_v45  ;;  %v243_v28 = vmul.f32 0.6931472, %v389_v17 }
 0x156   :  { %v393_v23 = vpop.eup %392  ;;  %414 = vrcp.f32 %v143_v52  ;;  %v266_v25 = vsub.f32 %v207_v8, %v239_v12 }
 0x157   :  { %v167_v61 = vpop.xlane.xlu1 %166  ;;  %v177_v63 = vpop.xlane.xlu0 %176 }
 0x158   :  { %v199_v3 = vmul.f32 %v365_v47, %v167_v61  ;;  %v209_v20 = vmul.f32 %v387_v10, %v177_v63  ;;  %v395_v19 = vpop.eup %394  ;;  %v286_v36 = vsel %vm278_vm0, %v266_v25, 0.0 }
 0x159   :  { %v397_v34 = vpop.eup %396  ;;  %v245_v38 = vmul.f32 0.6931472, %v395_v19 }
 0x15a   :  { %v262_v9 = vsub.f32 %v199_v3, %v231_v62  ;;  %v267_v32 = vsub.f32 %v209_v20, %v241_v22  ;;  %v399_v39 = vpop.eup %398  ;;  %v247_v46 = vmul.f32 0.6931472, %v397_v34 }
 0x15b   :  { %v145_v13 = vpop.xlane.xlu1 %144  ;;  %v179_v16 = vpop.xlane.xlu0 %178 }
 0x15c   :  { %v279_v18 = vsel %vm278_vm0, %v262_v9, 0.0  ;;  %v211_v26 = vmul.f32 %v391_v15, %v179_v16  ;;  %416 = vlog2.f32 %v145_v13  ;;  %v401_v43 = vpop.eup %400  ;;  %v288_v44 = vsel %vm278_vm0, %v267_v32, 0.0 }
 0x15d   :  { %v281_v21 = vadd.f32 %v280_v11, %v279_v18  ;;  %418 = vrcp.f32 %v145_v13  ;;  %v403_v48 = vpop.eup %402  ;;  %v249_v55 = vmul.f32 0.6931472, %v401_v43 }
 0x15e   :  { %v268_v37 = vsub.f32 %v211_v26, %v243_v28  ;;  %v405_v50 = vpop.eup %404  ;;  %v251_v61 = vmul.f32 0.6931472, %v403_v48 }
 0x15f   :  { %v283_v27 = vadd.f32 %v282_v24, %v281_v21  ;;  %v147_v29 = vpop.xlane.xlu1 %146  ;;  %v181_v30 = vpop.xlane.xlu0 %180 }
 0x160   :  { %v213_v33 = vmul.f32 %v393_v23, %v181_v30  ;;  %420 = vlog2.f32 %v147_v29  ;;  %v290_v51 = vsel %vm278_vm0, %v268_v37, 0.0  ;;  %v407_v53 = vpop.eup %406 }
 0x161   :  { %v285_v35 = vadd.f32 %v284_v31, %v283_v27  ;;  %422 = vrcp.f32 %v147_v29  ;;  %v409_v58 = vpop.eup %408 }
 0x162   :  { %v269_v45 = vsub.f32 %v213_v33, %v245_v38  ;;  %v411_v63 = vpop.eup %410  ;;  %v253_v7 = vmul.f32 0.6931472, %v409_v58 }
 0x163   :  { %v287_v40 = vadd.f32 %v286_v36, %v285_v35  ;;  %v149_v41 = vpop.xlane.xlu1 %148  ;;  %v183_v42 = vpop.xlane.xlu0 %182  ;;  %v255_v13 = vmul.f32 0.6931472, %v411_v63 }
 0x164   :  { %v215_v47 = vmul.f32 %v399_v39, %v183_v42  ;;  %424 = vlog2.f32 %v149_v41  ;;  %v292_v59 = vsel %vm278_vm0, %v269_v45, 0.0  ;;  %v413_v1 = vpop.eup %412 }
 0x165   :  { %v289_v49 = vadd.f32 %v288_v44, %v287_v40  ;;  %426 = vrcp.f32 %v149_v41  ;;  %v415_v5 = vpop.eup %414 }
 0x166   :  { %v270_v52 = vsub.f32 %v215_v47, %v247_v46 }
 0x167   :  { %v291_v54 = vadd.f32 %v290_v51, %v289_v49  ;;  %v185_v56 = vpop.xlane.xlu1 %184  ;;  %v187_v57 = vpop.xlane.xlu0 %186 }
 0x168   :  { %v217_v60 = vmul.f32 %v405_v50, %v185_v56  ;;  %v219_v62 = vmul.f32 %v407_v53, %v187_v57  ;;  %v294_v2 = vsel %vm278_vm0, %v270_v52, 0.0 }
 0x169   :  { %v293_v0 = vadd.f32 %v292_v59, %v291_v54  ;;  %v417_v10 = vpop.eup %416 }
 0x16a   :  { %v271_v3 = vsub.f32 %v217_v60, %v249_v55  ;;  %v272_v4 = vsub.f32 %v219_v62, %v251_v61  ;;  %v419_v17 = vpop.eup %418  ;;  %v257_v24 = vmul.f32 0.6931472, %v417_v10 }
 0x16b   :  { %v295_v6 = vadd.f32 %v294_v2, %v293_v0  ;;  %v189_v8 = vpop.xlane.xlu1 %188  ;;  %v191_v9 = vpop.xlane.xlu0 %190 }
 0x16c   :  { %v296_v11 = vsel %vm278_vm0, %v271_v3, 0.0  ;;  %v221_v12 = vmul.f32 %v413_v1, %v189_v8  ;;  %v223_v16 = vmul.f32 %v415_v5, %v191_v9  ;;  %v298_v20 = vsel %vm278_vm0, %v272_v4, 0.0 }
 0x16d   :  { %v297_v14 = vadd.f32 %v296_v11, %v295_v6  ;;  %v421_v18 = vpop.eup %420 }
 0x16e   :  { %v273_v15 = vsub.f32 %v221_v12, %v253_v7  ;;  %v274_v21 = vsub.f32 %v223_v16, %v255_v13  ;;  %v423_v22 = vpop.eup %422  ;;  %v259_v28 = vmul.f32 0.6931472, %v421_v18 }
 0x16f   :  { %v299_v23 = vadd.f32 %v298_v20, %v297_v14  ;;  %v193_v25 = vpop.xlane.xlu1 %192  ;;  %v195_v26 = vpop.xlane.xlu0 %194 }
 0x170   :  { %v300_v19 = vsel %vm278_vm0, %v273_v15, 0.0  ;;  %v225_v27 = vmul.f32 %v419_v17, %v193_v25  ;;  %v227_v29 = vmul.f32 %v423_v22, %v195_v26  ;;  %v302_v32 = vsel %vm278_vm0, %v274_v21, 0.0 }
 0x171   :  { %v301_v30 = vadd.f32 %v300_v19, %v299_v23  ;;  %v425_v31 = vpop.eup %424 }
 0x172   :  { %v275_v33 = vsub.f32 %v225_v27, %v257_v24  ;;  %v276_v34 = vsub.f32 %v227_v29, %v259_v28  ;;  %v427_v35 = vpop.eup %426  ;;  %v261_v39 = vmul.f32 0.6931472, %v425_v31 }
 0x173   :  { %v303_v36 = vadd.f32 %v302_v32, %v301_v30  ;;  %v197_v37 = vpop.xlane.xlu1 %196 }
 0x174   :  { %v304_v38 = vsel %vm278_vm0, %v275_v33, 0.0  ;;  %v229_v40 = vmul.f32 %v427_v35, %v197_v37  ;;  %v306_v43 = vsel %vm278_vm0, %v276_v34, 0.0 }
 0x175   :  { %v305_v41 = vadd.f32 %v304_v38, %v303_v36 }
 0x176   :  { %v277_v42 = vsub.f32 %v229_v40, %v261_v39 }
 0x177   :  { %v307_v44 = vadd.f32 %v306_v43, %v305_v41 }
 0x178   :  { %v308_v45 = vsel %vm278_vm0, %v277_v42, 0.0 }
 0x179   :  { %v309_v46 = vadd.f32 %v308_v45, %v307_v44 }
 0x17b   :  { %310 = vadd.xlane.f32.xlu0 %v309_v46 }
 0x204   :  { %v311_v47 = vpop.xlane.xlu0 %310 }
 0x205   :  { %v312_v48 = vrot.slane %v311_v47, 4 }
 0x207   :  { %v313_v49 = vadd.f32 %v312_v48, %v311_v47 }
 0x209   :  { %v314_v50 = vrot.slane %v313_v49, 2 }
 0x20b   :  { %v315_v51 = vadd.f32 %v314_v50, %v313_v49 }
 0x20d   :  { %v316_v52 = vrot.slane %v315_v51, 1 }
 0x20f   :  { %v317_v53 = vadd.f32 %v316_v52, %v315_v51 }
 0x211   :  { %327 = vpush %v317_v53 }
 0x242   :  { %s328_s0 = spop %327 }
 0x243   :  { %s319_s13 = ssub.f32 0.0, %s328_s0 }
 0x245   :  { %v320_v54 = vstv %s319_s13 }
 0x246   :  { %321 = vst [vmem:[%s554_s1] sm:$0xff] %v320_v54 }
 0x247   :  { %326 = vsyncpa [#allocation3], 1 }

</bundles_post_ra>
